<compile_context>
chip_gen: v7x
topology: tpu7x:2x2x1
jax: 0.10.0
libtpu: 0.0.40
codegen_flags: <defaults>
</compile_context>

<pallas_src>
import functools

import jax
import jax.numpy as jnp
from jax.experimental import pallas as pl
from jax.experimental.pallas import tpu as pltpu

LOG_STD_MIN = -10.0
LOG_STD_MAX = 2.0

HID1 = 128
HID2 = 64


def _round_up(x, m):
    return ((x + m - 1) // m) * m


def actor_kernel(obs_ref, w1_ref, b1_ref, w2_ref, b2_ref, wh_ref, bh_ref,
                 lo_ref, hi_ref, out_ref, *, n_head_out):
    # In-kernel bf16 cast of the obs tile (rides spare VPU slots; avoids a
    # separate wrapper-side HBM read+write of obs just to change dtype).
    x = obs_ref[...].astype(w1_ref.dtype)

    # FC1 + relu  (bf16 operands, f32 accumulation; elementwise stays f32)
    h1 = jnp.dot(x, w1_ref[...], preferred_element_type=jnp.float32)
    h1 = jnp.maximum(h1 + b1_ref[...], 0.0)

    # FC2 + relu
    h2 = jnp.dot(h1.astype(w2_ref.dtype), w2_ref[...],
                 preferred_element_type=jnp.float32)
    h2 = jnp.maximum(h2 + b2_ref[...], 0.0)

    # Fused mu/log_std heads: one MXU matmul into a 128-lane slab; only the
    # 2*dim_action useful lanes are biased, clamped and written back.
    y = jnp.dot(h2.astype(wh_ref.dtype), wh_ref[...],
                preferred_element_type=jnp.float32)
    y = y[:, :n_head_out] + bh_ref[...]

    # Per-lane clamp: mu lanes have (-inf, +inf) bounds (no-op), log_std lanes
    # have (LOG_STD_MIN, LOG_STD_MAX).  Two VPU ops, no iota/where.
    out_ref[...] = jnp.minimum(jnp.maximum(y, lo_ref[...]),
                               hi_ref[...]).astype(out_ref.dtype)


def actor_forward(obs, params, *, block_b=2048, compute_dtype=jnp.bfloat16):
    """obs: [B, dim_obs] float32 -> (mu [B, dim_action], log_std [B, dim_action])."""
    B, dim_obs = obs.shape
    dim_action = params["wmu"].shape[1]
    n_head_out = 2 * dim_action
    npad = _round_up(max(n_head_out, 128), 128)   # lane-dense head-matmul width

    # --- fused + padded head weight/bias and per-lane clamp bounds (tiny arrays).
    wh = jnp.concatenate([params["wmu"], params["wstd"]], axis=1)
    wh = jnp.pad(wh, ((0, 0), (0, npad - n_head_out))).astype(compute_dtype)
    bh = jnp.concatenate([params["bmu"], params["bstd"]], axis=1).astype(jnp.float32)
    lo = jnp.concatenate(
        [jnp.full((1, dim_action), -jnp.inf, jnp.float32),
         jnp.full((1, dim_action), LOG_STD_MIN, jnp.float32)], axis=1)
    hi = jnp.concatenate(
        [jnp.full((1, dim_action), jnp.inf, jnp.float32),
         jnp.full((1, dim_action), LOG_STD_MAX, jnp.float32)], axis=1)

    w1 = params["w1"].astype(compute_dtype)
    w2 = params["w2"].astype(compute_dtype)
    b1 = params["b1"].astype(jnp.float32)
    b2 = params["b2"].astype(jnp.float32)

    # --- batch tiling: big tiles (amortize per-step overhead), >=2 grid iters
    # for mid/large batches so v7x's two TensorCores both get work.
    if B <= 8:
        tb = B                          # single tile; tb == full batch dim is legal
    else:
        n_tiles = pl.cdiv(B, block_b)
        if B >= 256:
            n_tiles = max(2, n_tiles)
        tb = min(block_b, _round_up(pl.cdiv(B, n_tiles), 8))
    b_pad = _round_up(B, tb)
    obs_in = obs if b_pad == B else jnp.pad(obs, ((0, b_pad - B), (0, 0)))

    grid = (b_pad // tb,)
    kernel = functools.partial(actor_kernel, n_head_out=n_head_out)

    out = pl.pallas_call(
        kernel,
        out_shape=jax.ShapeDtypeStruct((b_pad, n_head_out), jnp.float32),
        grid=grid,
        in_specs=[
            pl.BlockSpec((tb, dim_obs), lambda i: (i, 0)),      # obs (f32, batch-tiled)
            pl.BlockSpec((dim_obs, HID1), lambda i: (0, 0)),    # W1 (resident)
            pl.BlockSpec((1, HID1), lambda i: (0, 0)),          # b1
            pl.BlockSpec((HID1, HID2), lambda i: (0, 0)),       # W2
            pl.BlockSpec((1, HID2), lambda i: (0, 0)),          # b2
            pl.BlockSpec((HID2, npad), lambda i: (0, 0)),       # fused head W
            pl.BlockSpec((1, n_head_out), lambda i: (0, 0)),    # fused head b
            pl.BlockSpec((1, n_head_out), lambda i: (0, 0)),    # clamp lo
            pl.BlockSpec((1, n_head_out), lambda i: (0, 0)),    # clamp hi
        ],
        out_specs=pl.BlockSpec((tb, n_head_out), lambda i: (i, 0)),
        compiler_params=pltpu.CompilerParams(
            dimension_semantics=("parallel",)),
        # Per-tile VMEM even at tb=2048 is well below default scoped limits on
        # v5e/v6e/v7x; set vmem_limit_bytes explicitly only if block_b > ~4096.
    )(obs_in, w1, b1, w2, b2, wh, bh, lo, hi)

    out = out if b_pad == B else out[:B]
    return out[:, :dim_action], out[:, dim_action:]


def init_actor_params(key, dim_observation, dim_action):
    """Deterministic synthetic parameters. Weights stored as [in, out]."""
    ks = jax.random.split(key, 8)

    def lin(kw, kb, fan_in, fan_out):
        bound = 1.0 / jnp.sqrt(fan_in)   # torch.nn.Linear default-ish init
        w = jax.random.uniform(kw, (fan_in, fan_out), jnp.float32, -bound, bound)
        b = jax.random.uniform(kb, (1, fan_out), jnp.float32, -bound, bound)
        return w, b

    w1, b1 = lin(ks[0], ks[1], dim_observation, HID1)
    w2, b2 = lin(ks[2], ks[3], HID1, HID2)
    wmu, bmu = lin(ks[4], ks[5], HID2, dim_action)
    wstd, bstd = lin(ks[6], ks[7], HID2, dim_action)
    return dict(w1=w1, b1=b1, w2=w2, b2=b2,
                wmu=wmu, bmu=bmu, wstd=wstd, bstd=bstd)


def actor_forward_ref(obs, p, compute_dtype=jnp.bfloat16):
    """Pure-JAX reference using the same bf16-operand / f32-accumulate plan."""
    cd = compute_dtype

    def mm(a, w):
        return jnp.dot(a.astype(cd), w.astype(cd),
                       preferred_element_type=jnp.float32)

    x = jnp.maximum(mm(obs, p["w1"]) + p["b1"], 0.0)
    x = jnp.maximum(mm(x, p["w2"]) + p["b2"], 0.0)
    mu = mm(x, p["wmu"]) + p["bmu"]
    log_std = jnp.clip(mm(x, p["wstd"]) + p["bstd"], LOG_STD_MIN, LOG_STD_MAX)
    return mu, log_std


if __name__ == "__main__":
    key = jax.random.PRNGKey(0)
    k_obs, k_obs2, k_param = jax.random.split(key, 3)

    dim_observation = 16
    dim_action = 2
    params = init_actor_params(k_param, dim_observation, dim_action)

    # Small batch (single-tile path, no padding).
    batch = 2
    obs = jax.random.normal(k_obs, (batch, dim_observation), jnp.float32)
    mu, log_std = actor_forward(obs, params)
    jax.block_until_ready((mu, log_std))

    mu_ref, log_std_ref = actor_forward_ref(obs, params)
    assert mu.shape == (batch, dim_action)
    assert log_std.shape == (batch, dim_action)
    assert jnp.allclose(mu, mu_ref, atol=1e-2, rtol=1e-2)
    assert jnp.allclose(log_std, log_std_ref, atol=1e-2, rtol=1e-2)
    assert bool(jnp.all(log_std <= LOG_STD_MAX)) and bool(jnp.all(log_std >= LOG_STD_MIN))

    # Larger batch: exercises the multi-tile grid + remainder padding path.
    batch2 = 300
    obs2 = jax.random.normal(k_obs2, (batch2, dim_observation), jnp.float32)
    mu2, log_std2 = actor_forward(obs2, params)
    jax.block_until_ready((mu2, log_std2))
    mu2_ref, log_std2_ref = actor_forward_ref(obs2, params)
    assert mu2.shape == (batch2, dim_action)
    assert jnp.allclose(mu2, mu2_ref, atol=1e-2, rtol=1e-2)
    assert jnp.allclose(log_std2, log_std2_ref, atol=1e-2, rtol=1e-2)

    # TODO(synk): Normal rsample in evaluate()/get_action() is host-side
    # distribution logic, not part of forward(); left to plain JAX.

    print("KERNEL_OK")
</pallas_src>

<mosaic_0001>
module attributes {stable_mosaic.version = 11 : i64} {
  func.func @actor_kernel(%arg0: i32, %arg1: memref<2x16xf32, #tpu.memory_space<vmem>>, %arg2: memref<16x128xbf16, #tpu.memory_space<vmem>>, %arg3: memref<1x128xf32, #tpu.memory_space<vmem>>, %arg4: memref<128x64xbf16, #tpu.memory_space<vmem>>, %arg5: memref<1x64xf32, #tpu.memory_space<vmem>>, %arg6: memref<64x128xbf16, #tpu.memory_space<vmem>>, %arg7: memref<1x4xf32, #tpu.memory_space<vmem>>, %arg8: memref<1x4xf32, #tpu.memory_space<vmem>>, %arg9: memref<1x4xf32, #tpu.memory_space<vmem>>, %arg10: memref<2x4xf32, #tpu.memory_space<vmem>>) attributes {dimension_semantics = [#tpu.dimension_semantics<parallel>], iteration_bounds = array<i64: 1>, scalar_prefetch = 0 : i64, scratch_operands = 0 : i64, tpu.core_type = #tpu.core_type<tc>, window_params = [{transform_indices = @transform_0, window_bounds = array<i64: 2, 16>}, {pipeline_mode = #tpu.pipeline_mode<synchronous>, transform_indices = @transform_1, window_bounds = array<i64: 16, 128>}, {pipeline_mode = #tpu.pipeline_mode<synchronous>, transform_indices = @transform_2, window_bounds = array<i64: 1, 128>}, {pipeline_mode = #tpu.pipeline_mode<synchronous>, transform_indices = @transform_3, window_bounds = array<i64: 128, 64>}, {pipeline_mode = #tpu.pipeline_mode<synchronous>, transform_indices = @transform_4, window_bounds = array<i64: 1, 64>}, {pipeline_mode = #tpu.pipeline_mode<synchronous>, transform_indices = @transform_5, window_bounds = array<i64: 64, 128>}, {pipeline_mode = #tpu.pipeline_mode<synchronous>, transform_indices = @transform_6, window_bounds = array<i64: 1, 4>}, {pipeline_mode = #tpu.pipeline_mode<synchronous>, transform_indices = @transform_7, window_bounds = array<i64: 1, 4>}, {pipeline_mode = #tpu.pipeline_mode<synchronous>, transform_indices = @transform_8, window_bounds = array<i64: 1, 4>}, {transform_indices = @transform_9, window_bounds = array<i64: 2, 4>}]} {
    %c0 = arith.constant 0 : index
    %c0_0 = arith.constant 0 : index
    %0 = vector.load %arg1[%c0, %c0_0] : memref<2x16xf32, #tpu.memory_space<vmem>>, vector<2x16xf32>
    %1 = arith.truncf %0 : vector<2x16xf32> to vector<2x16xbf16>
    %c0_1 = arith.constant 0 : index
    %c0_2 = arith.constant 0 : index
    %2 = vector.load %arg2[%c0_1, %c0_2] : memref<16x128xbf16, #tpu.memory_space<vmem>>, vector<16x128xbf16>
    %cst = arith.constant dense<0.000000e+00> : vector<2x128xf32>
    %3 = tpu.matmul %1, %2, %cst {dimension_numbers = #tpu.dot_dimension_numbers<[1], [0], [0], [1], [0, 0, 1, 1], [], []>} : vector<2x16xbf16>, vector<16x128xbf16>, vector<2x128xf32> -> vector<2x128xf32>
    %c0_3 = arith.constant 0 : index
    %c0_4 = arith.constant 0 : index
    %4 = vector.load %arg3[%c0_3, %c0_4] : memref<1x128xf32, #tpu.memory_space<vmem>>, vector<1x128xf32>
    %5 = vector.broadcast %4 : vector<1x128xf32> to vector<2x128xf32>
    %6 = arith.addf %3, %5 : vector<2x128xf32>
    %cst_5 = arith.constant 0.000000e+00 : f32
    %7 = vector.broadcast %cst_5 : f32 to vector<2x128xf32>
    %8 = arith.maximumf %6, %7 : vector<2x128xf32>
    %9 = arith.truncf %8 : vector<2x128xf32> to vector<2x128xbf16>
    %c0_6 = arith.constant 0 : index
    %c0_7 = arith.constant 0 : index
    %10 = vector.load %arg4[%c0_6, %c0_7] : memref<128x64xbf16, #tpu.memory_space<vmem>>, vector<128x64xbf16>
    %cst_8 = arith.constant dense<0.000000e+00> : vector<2x64xf32>
    %11 = tpu.matmul %9, %10, %cst_8 {dimension_numbers = #tpu.dot_dimension_numbers<[1], [0], [0], [1], [0, 0, 1, 1], [], []>} : vector<2x128xbf16>, vector<128x64xbf16>, vector<2x64xf32> -> vector<2x64xf32>
    %c0_9 = arith.constant 0 : index
    %c0_10 = arith.constant 0 : index
    %12 = vector.load %arg5[%c0_9, %c0_10] : memref<1x64xf32, #tpu.memory_space<vmem>>, vector<1x64xf32>
    %13 = vector.broadcast %12 : vector<1x64xf32> to vector<2x64xf32>
    %14 = arith.addf %11, %13 : vector<2x64xf32>
    %cst_11 = arith.constant 0.000000e+00 : f32
    %15 = vector.broadcast %cst_11 : f32 to vector<2x64xf32>
    %16 = arith.maximumf %14, %15 : vector<2x64xf32>
    %17 = arith.truncf %16 : vector<2x64xf32> to vector<2x64xbf16>
    %c0_12 = arith.constant 0 : index
    %c0_13 = arith.constant 0 : index
    %18 = vector.load %arg6[%c0_12, %c0_13] : memref<64x128xbf16, #tpu.memory_space<vmem>>, vector<64x128xbf16>
    %cst_14 = arith.constant dense<0.000000e+00> : vector<2x128xf32>
    %19 = tpu.matmul %17, %18, %cst_14 {dimension_numbers = #tpu.dot_dimension_numbers<[1], [0], [0], [1], [0, 0, 1, 1], [], []>} : vector<2x64xbf16>, vector<64x128xbf16>, vector<2x128xf32> -> vector<2x128xf32>
    %20 = vector.extract_strided_slice %19 {offsets = [0, 0], sizes = [2, 4], strides = [1, 1]} : vector<2x128xf32> to vector<2x4xf32>
    %c0_15 = arith.constant 0 : index
    %c0_16 = arith.constant 0 : index
    %21 = vector.load %arg7[%c0_15, %c0_16] : memref<1x4xf32, #tpu.memory_space<vmem>>, vector<1x4xf32>
    %22 = vector.broadcast %21 : vector<1x4xf32> to vector<2x4xf32>
    %23 = arith.addf %20, %22 : vector<2x4xf32>
    %c0_17 = arith.constant 0 : index
    %c0_18 = arith.constant 0 : index
    %24 = vector.load %arg8[%c0_17, %c0_18] : memref<1x4xf32, #tpu.memory_space<vmem>>, vector<1x4xf32>
    %25 = vector.broadcast %24 : vector<1x4xf32> to vector<2x4xf32>
    %26 = arith.maximumf %23, %25 : vector<2x4xf32>
    %c0_19 = arith.constant 0 : index
    %c0_20 = arith.constant 0 : index
    %27 = vector.load %arg9[%c0_19, %c0_20] : memref<1x4xf32, #tpu.memory_space<vmem>>, vector<1x4xf32>
    %28 = vector.broadcast %27 : vector<1x4xf32> to vector<2x4xf32>
    %29 = arith.minimumf %26, %28 : vector<2x4xf32>
    %c0_21 = arith.constant 0 : index
    %c0_22 = arith.constant 0 : index
    %30 = vector.load %arg10[%c0_21, %c0_22] : memref<2x4xf32, #tpu.memory_space<vmem>>, vector<2x4xf32>
    tpu.vector_store %arg10[%c0_21, %c0_22], %29 {strides = array<i32>} : memref<2x4xf32, #tpu.memory_space<vmem>>, vector<2x4xf32>,
    return
  }
  func.func @transform_0(%arg0: i32) -> (i32, i32) {
    %c0_i32 = arith.constant 0 : i32
    %c0_i32_0 = arith.constant 0 : i32
    return %arg0, %c0_i32 : i32, i32
  }
  func.func @transform_1(%arg0: i32) -> (i32, i32) {
    %c0_i32 = arith.constant 0 : i32
    %c0_i32_0 = arith.constant 0 : i32
    %c0_i32_1 = arith.constant 0 : i32
    return %c0_i32, %c0_i32_0 : i32, i32
  }
  func.func @transform_2(%arg0: i32) -> (i32, i32) {
    %c0_i32 = arith.constant 0 : i32
    %c0_i32_0 = arith.constant 0 : i32
    %c0_i32_1 = arith.constant 0 : i32
    return %c0_i32, %c0_i32_0 : i32, i32
  }
  func.func @transform_3(%arg0: i32) -> (i32, i32) {
    %c0_i32 = arith.constant 0 : i32
    %c0_i32_0 = arith.constant 0 : i32
    %c0_i32_1 = arith.constant 0 : i32
    return %c0_i32, %c0_i32_0 : i32, i32
  }
  func.func @transform_4(%arg0: i32) -> (i32, i32) {
    %c0_i32 = arith.constant 0 : i32
    %c0_i32_0 = arith.constant 0 : i32
    %c0_i32_1 = arith.constant 0 : i32
    return %c0_i32, %c0_i32_0 : i32, i32
  }
  func.func @transform_5(%arg0: i32) -> (i32, i32) {
    %c0_i32 = arith.constant 0 : i32
    %c0_i32_0 = arith.constant 0 : i32
    %c0_i32_1 = arith.constant 0 : i32
    return %c0_i32, %c0_i32_0 : i32, i32
  }
  func.func @transform_6(%arg0: i32) -> (i32, i32) {
    %c0_i32 = arith.constant 0 : i32
    %c0_i32_0 = arith.constant 0 : i32
    %c0_i32_1 = arith.constant 0 : i32
    return %c0_i32, %c0_i32_0 : i32, i32
  }
  func.func @transform_7(%arg0: i32) -> (i32, i32) {
    %c0_i32 = arith.constant 0 : i32
    %c0_i32_0 = arith.constant 0 : i32
    %c0_i32_1 = arith.constant 0 : i32
    return %c0_i32, %c0_i32_0 : i32, i32
  }
  func.func @transform_8(%arg0: i32) -> (i32, i32) {
    %c0_i32 = arith.constant 0 : i32
    %c0_i32_0 = arith.constant 0 : i32
    %c0_i32_1 = arith.constant 0 : i32
    return %c0_i32, %c0_i32_0 : i32, i32
  }
  func.func @transform_9(%arg0: i32) -> (i32, i32) {
    %c0_i32 = arith.constant 0 : i32
    %c0_i32_0 = arith.constant 0 : i32
    return %arg0, %c0_i32 : i32, i32
  }
}

</mosaic_0001>

<bundles_post_ra>
// kernel: tpu_custom_call.1
= control target key start
LH: loop header
LB: loop body
LE: loop exit
PB: predicated region body
PF: predicated region fallthrough
CT: control target
= control target key end

     0   :  { %v440_v1 = vmov 0.0   ;;  %vm441_vm0 = vmmov 0   ;;  %vm51_vm1 = vcmask 130048   ;;  %s562_s0 = inlined_call_operand.vmem [shape: f32[2,16], index: 0, kind: input, shape index: {}]   ;;  %s563_s1 = inlined_call_operand.vmem [shape: bf16[16,128], index: 1, kind: input, shape index: {}]   ;;  %s564_s2 = inlined_call_operand.vmem [shape: f32[1,128], index: 2, kind: input, shape index: {}]   ;;  %s565_s3 = inlined_call_operand.vmem [shape: bf16[128,64], index: 3, kind: input, shape index: {}]   ;;  %s566_s4 = inlined_call_operand.vmem [shape: f32[1,64], index: 4, kind: input, shape index: {}]   ;;  %s567_s5 = inlined_call_operand.vmem [shape: bf16[64,128], index: 5, kind: input, shape index: {}]   ;;  %s568_s6 = inlined_call_operand.vmem [shape: f32[1,4], index: 6, kind: input, shape index: {}]   ;;  %s569_s7 = inlined_call_operand.vmem [shape: f32[1,4], index: 7, kind: input, shape index: {}]   ;;  %s570_s8 = inlined_call_operand.vmem [shape: f32[1,4], index: 8, kind: input, shape index: {}]   ;;  %s571_s9 = inlined_call_operand.hbm [shape: f32[2,4], index: 9, kind: output, shape index: {}]  }
   0x1   :  { %v403_v0 = vld [vmem:[%s563_s1] sm:$0xff]   ;;  %362 = vmatprep.subr.bf16.mxu0 %v440_v1  ;;  %368 = vmatprep.subr.bf16.mxu1 %v440_v1  ;;  %v405_v5 = vld [vmem:[%s565_s3 + $0x8] sm:$0xff]   ;;  %v406_v6 = vld [vmem:[%s565_s3 + $0x10] sm:$0xff]  }
   0x2   :  { %v34_v2 = vld [vmem:[%s562_s0] sm:$0x3]  ;;  %363 = vmatpush3.bf16.msra.mxu0 %v403_v0  ;;  %364 = vmatprep.mubr.msk.bf16.mxu0 %vm441_vm0, %v440_v1  ;;  %v407_v7 = vld [vmem:[%s565_s3 + $0x18] sm:$0xff]  }
   0x3   :  { %v35_v3 = vpack.c.bf16 %v34_v2, %v34_v2  ;;  %v404_v4 = vld [vmem:[%s565_s3] sm:$0xff]   ;;  %384 = vmatprep.mubr.msk.bf16.mxu1 %vm441_vm0, %v440_v1  ;;  %388 = vmatprep.subr.bf16.mxu0 %v440_v1 }
   0x4   :  { %369 = vmatpush3.bf16.msra.mxu1 %v404_v4 }
   0x5   :  { %365 = vmatmul.mubr.msk.bf16.vlgmr.msra.gmra.mrb[0].mxu0 %vm51_vm1, %v35_v3  ;;  %370 = vmatprep.subr.bf16.mxu1 %v440_v1 }
   0x6   :  { %396 = vmatprep.mubr.msk.bf16.mxu0 %vm441_vm0, %v440_v1 }
   0x8   :  { %371 = vmatpush3.bf16.msra.mxu1 %v405_v5 }
   0x9   :  { %372 = vmatprep.subr.bf16.mxu1 %v440_v1 }
   0xc   :  { %373 = vmatpush3.bf16.msra.mxu1 %v406_v6 }
   0xd   :  { %14 = vsyncpa [#allocation3], 0  ;;  %374 = vmatprep.subr.bf16.mxu1 %v440_v1  ;;  %v408_v8 = vld [vmem:[%s565_s3 + $0x20] sm:$0xff]   ;;  %v409_v9 = vld [vmem:[%s565_s3 + $0x28] sm:$0xff]   ;;  %vm242_vm2 = vcmask 523264   ;;  %s442_s18 = smov [#allocation2]  }
   0xe   :  { %v410_v10 = vld [vmem:[%s565_s3 + $0x30] sm:$0xff]   ;;  %v411_v11 = vld [vmem:[%s565_s3 + $0x38] sm:$0xff]   ;;  %v412_v12 = vld [vmem:[%s567_s5] sm:$0xff]   ;;  %s318_s19 = sshll.u32 %s442_s18, 4  ;;  %vm310_vm3 = vcmask 25600   ;;  %s319_s19 = int_to_ptr.vmem [resolvable:$true] %s318_s19 }
   0xf   :  { %389 = vmatpush3.bf16.msra.mxu0 %v412_v12  ;;  %v413_v13 = vld [vmem:[%s567_s5 + $0x8] sm:$0xff]   ;;  %v326_v14 = vld [vmem:[%s564_s2] ss:$0 sm:$0xff]  ;;  %v414_v22 = vld [vmem:[%s567_s5 + $0x10] sm:$0xff]   ;;  %p421_p1 = scmp.lt.s32.totalorder %s319_s19, %s319_s19 }
  0x10   :  { %375 = vmatpush3.bf16.msra.mxu1 %v407_v7  ;;  %390 = vmatprep.subr.bf16.mxu0 %v440_v1  ;;  %v415_v23 = vld [vmem:[%s567_s5 + $0x18] sm:$0xff]   ;;  %v329_v24 = vld [vmem:[%s566_s4] ss:$0 sm:$0xff] }
  0x11   :  { %376 = vmatprep.subr.bf16.mxu1 %v440_v1  ;;  %v343_v32 = vld [vmem:[%s568_s6] ss:$0 sm:$0xff]  ;;  %s416_s6 = scalar_lea.vmem %s319_s19, 32 }
  0x12   :  { %v344_v34 = vld [vmem:[%s569_s7] ss:$0 sm:$0xff]  ;;  %p417_p0 = scmp.ne.s32.totalorder %s319_s19, %s416_s6  ;;  %p422_p2 = scmp.lt.s32.totalorder %s416_s6, %s416_s6 }
  0x13   :  { %391 = vmatpush3.bf16.msra.mxu0 %v413_v13  ;;  %v345_v38 = vld [vmem:[%s570_s8] ss:$0 sm:$0xff] }
  0x14   :  { %377 = vmatpush3.bf16.msra.mxu1 %v408_v8  ;;  %392 = vmatprep.subr.bf16.mxu0 %v440_v1  ;;  %p423_p3 = por %p422_p2, %p421_p1 }
  0x15   :  { %378 = vmatprep.subr.bf16.mxu1 %v440_v1 }
  0x16   :  { %p424_p4 = pnand %p423_p3, %p417_p0 }
  0x17   :  { %393 = vmatpush3.bf16.msra.mxu0 %v414_v22 }
  0x18   :  { %379 = vmatpush3.bf16.msra.mxu1 %v409_v9  ;;  %394 = vmatprep.subr.bf16.mxu0 %v440_v1 }
  0x19   :  { %380 = vmatprep.subr.bf16.mxu1 %v440_v1 }
  0x1b   :  { %395 = vmatpush3.bf16.msra.mxu0 %v415_v23 }
  0x1c   :  { %381 = vmatpush3.bf16.msra.mxu1 %v410_v10 }
  0x1d   :  { %382 = vmatprep.subr.bf16.mxu1 %v440_v1 }
  0x20   :  { %383 = vmatpush3.bf16.msra.mxu1 %v411_v11 }
  0xd8   :  { %v89_v15 = vpop.f32.mrb[0].mxu0 }
  0xd9   :  { %v90_v16 = vadd.f32 %v326_v14, %v89_v15  ;;  %v366_v17 = vpop.f32.mrb[1].mxu0 }
  0xda   :  { %v92_v18 = vpop.f32.mrb[2].mxu0 }
  0xdb   :  { %v95_v19 = vmax.f32 %v90_v16, 0.0  ;;  %v367_v20 = vpop.f32.mrb[3].mxu0 }
  0xdd   :  { %v96_v21 = vpack.c.bf16 %v95_v19, %v95_v19 }
  0xdf   :  { %385 = vmatmul.mubr.bf16.vlgmr.msra.gmra.mrb[0].mxu1 %v96_v21 }
 0x1b2   :  { %v202_v25 = vpop.f32.mrb[0].mxu1 }
 0x1b3   :  { %v203_v26 = vadd.f32 %v329_v24, %v202_v25  ;;  %v386_v27 = vpop.f32.mrb[1].mxu1 }
 0x1b4   :  { %v205_v28 = vpop.f32.mrb[2].mxu1 }
 0x1b5   :  { %v208_v29 = vmax.f32 %v203_v26, 0.0  ;;  %v387_v30 = vpop.f32.mrb[3].mxu1 }
 0x1b7   :  { %v209_v31 = vpack.c.bf16 %v208_v29, %v208_v29 }
 0x1b9   :  { %397 = vmatmul.mubr.msk.bf16.vlgmr.msra.gmra.mrb[4].mxu0 %vm242_vm2, %v209_v31 }
 0x28c   :  { %v280_v33 = vpop.f32.mrb[4].mxu0 }
 0x28d   :  { %v293_v35 = vadd.f32 %v343_v32, %v280_v33  ;;  %v398_v36 = vpop.f32.mrb[5].mxu0 }
 0x28e   :  { %v283_v37 = vpop.f32.mrb[6].mxu0 }
 0x28f   :  { %v301_v39 = vmax.f32 %v293_v35, %v344_v34  ;;  %v399_v40 = vpop.f32.mrb[7].mxu0 }
 0x291   :  { %v309_v41 = vmin.f32 %v301_v39, %v345_v38 }
 0x293   :  { %311 = vst.msk [vmem:[#allocation2] sm:$0x3] %vm310_vm3, %v309_v41 }
 0x294   :  { %427 = shalt.err (!%p424_p4)
}
 0x295   :  { %s428_s21 = scalar_lea.hbm %s571_s9, 32 }
 0x296   :  { %p429_p5 = scmp.ne.s32.totalorder %s571_s9, %s428_s21  ;;  %p432_p6 = scmp.lt.u32.totalorder %s428_s21, %s571_s9 }
 0x298   :  { %p434_p7 = pnand %p432_p6, %p429_p5 }
 0x29a   :  { %437 = shalt.err (!%p434_p7)
}
 0x29b   :  { %321 = dma.vmem_to_hbm [thread:$0]  %s319_s19, 32, %s571_s9, [#allocation3]  }
 0x29c   :  { %438 = dma.done.wait [#allocation3], 32  }
 0x29d   :  { %439 = vsyncadd [#allocation3], 4294967264 }
 0x29e   :  { %325 = vsyncpa [#allocation3], 1 }

</bundles_post_ra>
